<compile_context>
chip_gen: v7x
topology: tpu7x:2x2x1
jax: 0.10.0
libtpu: 0.0.40
codegen_flags: <defaults>
</compile_context>

<pallas_src>
import jax
import jax.numpy as jnp
from jax.experimental import pallas as pl
from jax.experimental.pallas import tpu as pltpu


def _round_up(a: int, b: int) -> int:
    return (a + b - 1) // b * b


def _ceil_div(a: int, b: int) -> int:
    return -(-a // b)


# ----------------------------------------------------------------------------- kernel
def _pwff_kernel(x_ref, gamma_ref, beta_ref, w1_ref, b1_ref, w2_ref, b2_ref,
                 o_ref, xnorm_ref, acc_ref):
    f = pl.program_id(1)

    @pl.when(f == 0)
    def _():
        # LayerNorm (eps=1e-6, biased variance — matches nn.LayerNorm), computed once per
        # row tile with single-pass stats, cached in the MXU operand dtype for all F-slices.
        x = x_ref[...].astype(jnp.float32)
        mean = jnp.mean(x, axis=-1, keepdims=True)
        mean_sq = jnp.mean(x * x, axis=-1, keepdims=True)
        var = jnp.maximum(mean_sq - mean * mean, 0.0)
        xn = (x - mean) * jax.lax.rsqrt(var + 1e-6)
        xn = xn * gamma_ref[...] + beta_ref[...]
        xnorm_ref[...] = xn.astype(xnorm_ref.dtype)
        acc_ref[...] = jnp.zeros_like(acc_ref)

    # Linear(D -> tf) + bias + ReLU for this F-slice (narrow MXU operands, f32 accumulation).
    h = jnp.dot(xnorm_ref[...], w1_ref[...], preferred_element_type=jnp.float32)
    h = jnp.maximum(h + b1_ref[...], 0.0)

    # Partial Linear(tf -> D), accumulated in f32.
    acc_ref[...] += jnp.dot(h.astype(w2_ref.dtype), w2_ref[...],
                            preferred_element_type=jnp.float32)

    @pl.when(f == pl.num_programs(1) - 1)
    def _():
        # Residual uses the *original* (un-normalized) input.  Zero-padded rows produce
        # finite (beta-derived) garbage here that the wrapper slices off.
        y = acc_ref[...] + b2_ref[...] + x_ref[...].astype(jnp.float32)
        o_ref[...] = y.astype(o_ref.dtype)


# ----------------------------------------------------------------------- spec builders
def _const_spec(shape, index_map, single_buffer):
    """Block spec; single-buffered when its block index never changes (nothing to prefetch)."""
    if single_buffer and hasattr(pl, "Buffered"):
        try:
            return pl.BlockSpec(shape, index_map, pipeline_mode=pl.Buffered(1))
        except TypeError:  # older builds without the pipeline_mode kwarg
            pass
    return pl.BlockSpec(shape, index_map)


def _build_call(Mp, tm, D, Fp, tf, out_dtype, vmem_limit, cost, w_dtype):
    n_f = Fp // tf
    grid_spec = pltpu.PrefetchScalarGridSpec(
        num_scalar_prefetch=0,
        grid=(Mp // tm, n_f),
        in_specs=[
            pl.BlockSpec((tm, D), lambda i, f: (i, 0)),            # x rows (pipelined)
            _const_spec((1, D), lambda i, f: (0, 0), True),        # gamma
            _const_spec((1, D), lambda i, f: (0, 0), True),        # beta
            _const_spec((D, tf), lambda i, f: (0, f), n_f == 1),   # W1 slice
            _const_spec((1, tf), lambda i, f: (0, f), n_f == 1),   # b1 slice
            _const_spec((tf, D), lambda i, f: (f, 0), n_f == 1),   # W2 slice
            _const_spec((1, D), lambda i, f: (0, 0), True),        # b2
        ],
        out_specs=pl.BlockSpec((tm, D), lambda i, f: (i, 0)),
        scratch_shapes=[
            pltpu.VMEM((tm, D), w_dtype),       # cached x_norm (MXU LHS)
            pltpu.VMEM((tm, D), jnp.float32),   # f32 output accumulator
        ],
    )
    return pl.pallas_call(
        _pwff_kernel,
        out_shape=jax.ShapeDtypeStruct((Mp, D), out_dtype),
        grid_spec=grid_spec,
        compiler_params=pltpu.CompilerParams(
            dimension_semantics=("parallel", "arbitrary"),
            vmem_limit_bytes=vmem_limit,
        ),
        cost_estimate=cost,
    )


# ----------------------------------------------------------------------- tile selection
def _usable_vmem_bytes() -> int:
    """Physical VMEM minus ~12.5% headroom for Pallas internal scratch / pipeline state."""
    cap = 64 * 1024 * 1024  # conservative default (v7x per-TC VMEM)
    try:
        info = pltpu.get_tpu_info()
        cap_attr = getattr(info, "vmem_capacity_bytes", None)
        if cap_attr:
            cap = int(cap_attr)
    except Exception:  # hardware query unsupported: keep the conservative default
        pass
    return cap - cap // 8  # 64 MiB -> 56 MiB (v7x), 128 MiB -> 112 MiB (v5e/v6e)


def _estimate_vmem(tm, tf, D, x_bytes, w_bytes, n_f_steps) -> int:
    nbuf_w = 1 if n_f_steps == 1 else 2                       # W1/b1/W2 slice buffering
    params = nbuf_w * (2 * D * tf * w_bytes + tf * 4) + 3 * D * 4
    io = 4 * tm * D * x_bytes                                  # dbl-buffered x in + out
    scratch = tm * D * (w_bytes + 4)                           # x_norm cache + f32 acc
    temps = tm * tf * (4 + w_bytes) + 3 * tm * D * 4           # h f32 + h cast + f32 temps
    return params + io + scratch + temps


def _pick_row_tile(M, tm_target):
    align = 256 if M >= 512 else 16                    # MXU-friendly / bf16 sublane packing
    min_steps = 2 if M >= 2 * align else 1             # keep both v7x TensorCores busy
    n0 = max(min_steps, _ceil_div(M, tm_target))
    best = None
    for n in range(n0, n0 + 6):                        # minimize padded-row waste
        tm = _round_up(_ceil_div(M, n), align)
        Mp = _round_up(M, tm)
        if Mp // tm < min_steps:
            continue
        key = (Mp, -tm)
        if best is None or key < best[0]:
            best = (key, tm, Mp)
    if best is None:
        tm = _round_up(M, align)
        return tm, tm
    return best[1], best[2]


def _pick_f_tile(F, D, tm, x_bytes, w_bytes, usable, tf_target=2048):
    # Fully-resident weights if they fit (single F step).
    if _estimate_vmem(tm, F, D, x_bytes, w_bytes, 1) <= usable:
        return F
    # Otherwise stream 128-aligned F-slices; largest slice <= tf_target that fits.
    tf = min(_round_up(F, 128), _round_up(tf_target, 128))
    while tf > 128:
        if _estimate_vmem(tm, tf, D, x_bytes, w_bytes, _ceil_div(F, tf)) <= usable:
            return tf
        tf -= 128
    return 128


# ------------------------------------------------------------------------------ wrapper
def positionwise_feed_forward(x, gamma, beta, w1, b1, w2, b2, *,
                              tm=512, use_bf16_mxu=True):
    """Fused LayerNorm -> Linear(D,F) -> ReLU -> Linear(F,D) -> +residual.  x: [B, T, D]."""
    B, T, D = x.shape
    F = w1.shape[1]
    M = B * T

    w_dtype = jnp.bfloat16 if use_bf16_mxu else jnp.float32
    x_bytes = jnp.dtype(x.dtype).itemsize
    w_bytes = jnp.dtype(w_dtype).itemsize

    # --- tile selection ---------------------------------------------------------------
    tm_eff, Mp = _pick_row_tile(M, tm)
    usable = _usable_vmem_bytes()
    tf = _pick_f_tile(F, D, tm_eff, x_bytes, w_bytes, usable)
    Fp = _round_up(F, tf)
    n_f = Fp // tf

    # --- operands -----------------------------------------------------------------------
    x2 = x.reshape(M, D)
    if Mp != M:
        # Zero rows -> var=0 -> x_norm=0 -> finite garbage rows; sliced off below.
        x2 = jnp.pad(x2, ((0, Mp - M), (0, 0)))

    w1c = w1.astype(w_dtype)
    w2c = w2.astype(w_dtype)
    b1_2 = b1.reshape(1, F).astype(jnp.float32)
    if Fp != F:
        # Zero-padded F columns/rows contribute exactly zero to the output.
        w1c = jnp.pad(w1c, ((0, 0), (0, Fp - F)))
        w2c = jnp.pad(w2c, ((0, Fp - F), (0, 0)))
        b1_2 = jnp.pad(b1_2, ((0, 0), (0, Fp - F)))
    gamma2 = gamma.reshape(1, D).astype(jnp.float32)
    beta2 = beta.reshape(1, D).astype(jnp.float32)
    b2_2 = b2.reshape(1, D).astype(jnp.float32)

    # --- VMEM budget & cost estimate ------------------------------------------------------
    budget = _estimate_vmem(tm_eff, tf, D, x_bytes, w_bytes, n_f)
    vmem_limit = int(min(max(budget + budget // 2, 32 * 1024 * 1024), usable))

    cost = pl.CostEstimate(
        flops=4 * M * D * F,                 # two GEMMs, 2*M*D*F each
        transcendentals=M,                   # one rsqrt per row
        bytes_accessed=2 * M * D * x_bytes + 2 * D * F * w_bytes + (F + 3 * D) * 4,
    )

    out = _build_call(Mp, tm_eff, D, Fp, tf, x.dtype, vmem_limit, cost, w_dtype)(
        x2, gamma2, beta2, w1c, b1_2, w2c, b2_2)

    return out[:M].reshape(B, T, D)


# ---------------------------------------------------------------------------- reference
def _reference(x, gamma, beta, w1, b1, w2, b2):
    xf = x.astype(jnp.float32)
    mean = jnp.mean(xf, axis=-1, keepdims=True)
    var = jnp.mean((xf - mean) ** 2, axis=-1, keepdims=True)
    xn = (xf - mean) * jax.lax.rsqrt(var + 1e-6) * gamma + beta
    h = jnp.maximum(xn @ w1 + b1, 0.0)
    y = h @ w2 + b2
    return (y + xf).astype(x.dtype)


if __name__ == "__main__":
    # Small shapes consistent with the module: input_size=32, ff_size=64
    B, T, D, F = 2, 8, 32, 64

    key = jax.random.PRNGKey(0)
    k_x, k_w1, k_b1, k_w2, k_b2 = jax.random.split(key, 5)

    x = jax.random.normal(k_x, (B, T, D), dtype=jnp.float32)

    # Deterministic parameter init (LayerNorm: ones/zeros; Linears: small normals)
    gamma = jnp.ones((D,), jnp.float32)
    beta = jnp.zeros((D,), jnp.float32)
    w1 = jax.random.normal(k_w1, (D, F), dtype=jnp.float32) * (1.0 / D ** 0.5)
    b1 = jax.random.normal(k_b1, (F,), dtype=jnp.float32) * 0.01
    w2 = jax.random.normal(k_w2, (F, D), dtype=jnp.float32) * (1.0 / F ** 0.5)
    b2 = jax.random.normal(k_b2, (D,), dtype=jnp.float32) * 0.01

    out = positionwise_feed_forward(x, gamma, beta, w1, b1, w2, b2)
    out = jax.block_until_ready(out)

    ref = _reference(x, gamma, beta, w1, b1, w2, b2)
    assert out.shape == (B, T, D)
    # bf16 MXU operands with f32 accumulation -> slightly relaxed tolerance vs f32 ref.
    assert jnp.allclose(out, ref, atol=5e-2, rtol=5e-2), "mismatch vs reference"

    print("KERNEL_OK")
</pallas_src>

<mosaic_0001>
module attributes {stable_mosaic.version = 11 : i64} {
  func.func @_pwff_kernel(%arg0: i32, %arg1: i32, %arg2: memref<16x32xf32, #tpu.memory_space<vmem>>, %arg3: memref<1x32xf32, #tpu.memory_space<vmem>>, %arg4: memref<1x32xf32, #tpu.memory_space<vmem>>, %arg5: memref<32x64xbf16, #tpu.memory_space<vmem>>, %arg6: memref<1x64xf32, #tpu.memory_space<vmem>>, %arg7: memref<64x32xbf16, #tpu.memory_space<vmem>>, %arg8: memref<1x32xf32, #tpu.memory_space<vmem>>, %arg9: memref<16x32xf32, #tpu.memory_space<vmem>>, %arg10: memref<16x32xbf16, #tpu.memory_space<vmem>>, %arg11: memref<16x32xf32, #tpu.memory_space<vmem>>) attributes {dimension_semantics = [#tpu.dimension_semantics<parallel>, #tpu.dimension_semantics<arbitrary>], iteration_bounds = array<i64: 1, 1>, scalar_prefetch = 0 : i64, scratch_operands = 2 : i64, tpu.core_type = #tpu.core_type<tc>, window_params = [{transform_indices = @transform_0, window_bounds = array<i64: 16, 32>}, {pipeline_mode = #tpu.pipeline_mode<synchronous>, transform_indices = @transform_1, window_bounds = array<i64: 1, 32>}, {pipeline_mode = #tpu.pipeline_mode<synchronous>, transform_indices = @transform_2, window_bounds = array<i64: 1, 32>}, {pipeline_mode = #tpu.pipeline_mode<synchronous>, transform_indices = @transform_3, window_bounds = array<i64: 32, 64>}, {pipeline_mode = #tpu.pipeline_mode<synchronous>, transform_indices = @transform_4, window_bounds = array<i64: 1, 64>}, {pipeline_mode = #tpu.pipeline_mode<synchronous>, transform_indices = @transform_5, window_bounds = array<i64: 64, 32>}, {pipeline_mode = #tpu.pipeline_mode<synchronous>, transform_indices = @transform_6, window_bounds = array<i64: 1, 32>}, {transform_indices = @transform_7, window_bounds = array<i64: 16, 32>}]} {
    %c0_i32 = arith.constant 0 : i32
    %0 = arith.cmpi eq, %arg1, %c0_i32 : i32
    %1 = arith.extui %0 : i1 to i32
    %c0_i32_0 = arith.constant 0 : i32
    %2 = arith.cmpi ne, %1, %c0_i32_0 : i32
    scf.if %2 {
      %c0_16 = arith.constant 0 : index
      %c0_17 = arith.constant 0 : index
      %20 = vector.load %arg2[%c0_16, %c0_17] : memref<16x32xf32, #tpu.memory_space<vmem>>, vector<16x32xf32>
      %cst_18 = arith.constant dense<0.000000e+00> : vector<16xf32>
      %21 = vector.multi_reduction <add>, %20, %cst_18 [1] : vector<16x32xf32> to vector<16xf32>
      %22 = vector.shape_cast %21 : vector<16xf32> to vector<16x1xf32>
      %cst_19 = arith.constant 3.200000e+01 : f32
      %23 = vector.broadcast %cst_19 : f32 to vector<16x1xf32>
      %24 = arith.divf %22, %23 : vector<16x1xf32>
      %25 = arith.mulf %20, %20 : vector<16x32xf32>
      %cst_20 = arith.constant dense<0.000000e+00> : vector<16xf32>
      %26 = vector.multi_reduction <add>, %25, %cst_20 [1] : vector<16x32xf32> to vector<16xf32>
      %27 = vector.shape_cast %26 : vector<16xf32> to vector<16x1xf32>
      %cst_21 = arith.constant 3.200000e+01 : f32
      %28 = vector.broadcast %cst_21 : f32 to vector<16x1xf32>
      %29 = arith.divf %27, %28 : vector<16x1xf32>
      %30 = arith.mulf %24, %24 : vector<16x1xf32>
      %31 = arith.subf %29, %30 : vector<16x1xf32>
      %cst_22 = arith.constant 0.000000e+00 : f32
      %32 = vector.broadcast %cst_22 : f32 to vector<16x1xf32>
      %33 = arith.maximumf %31, %32 : vector<16x1xf32>
      %34 = vector.broadcast %24 : vector<16x1xf32> to vector<16x32xf32>
      %35 = arith.subf %20, %34 : vector<16x32xf32>
      %cst_23 = arith.constant 9.99999997E-7 : f32
      %36 = vector.broadcast %cst_23 : f32 to vector<16x1xf32>
      %37 = arith.addf %33, %36 : vector<16x1xf32>
      %38 = math.rsqrt %37 : vector<16x1xf32>
      %39 = vector.broadcast %38 : vector<16x1xf32> to vector<16x32xf32>
      %40 = arith.mulf %35, %39 : vector<16x32xf32>
      %c0_24 = arith.constant 0 : index
      %c0_25 = arith.constant 0 : index
      %41 = vector.load %arg3[%c0_24, %c0_25] : memref<1x32xf32, #tpu.memory_space<vmem>>, vector<1x32xf32>
      %42 = vector.broadcast %41 : vector<1x32xf32> to vector<16x32xf32>
      %43 = arith.mulf %40, %42 : vector<16x32xf32>
      %c0_26 = arith.constant 0 : index
      %c0_27 = arith.constant 0 : index
      %44 = vector.load %arg4[%c0_26, %c0_27] : memref<1x32xf32, #tpu.memory_space<vmem>>, vector<1x32xf32>
      %45 = vector.broadcast %44 : vector<1x32xf32> to vector<16x32xf32>
      %46 = arith.addf %43, %45 : vector<16x32xf32>
      %47 = arith.truncf %46 : vector<16x32xf32> to vector<16x32xbf16>
      %c0_28 = arith.constant 0 : index
      %c0_29 = arith.constant 0 : index
      %48 = vector.load %arg10[%c0_28, %c0_29] : memref<16x32xbf16, #tpu.memory_space<vmem>>, vector<16x32xbf16>
      tpu.vector_store %arg10[%c0_28, %c0_29], %47 {strides = array<i32>} : memref<16x32xbf16, #tpu.memory_space<vmem>>, vector<16x32xbf16>,
      %cst_30 = arith.constant 0.000000e+00 : f32
      %49 = vector.broadcast %cst_30 : f32 to vector<16x32xf32>
      %c0_31 = arith.constant 0 : index
      %c0_32 = arith.constant 0 : index
      %50 = vector.load %arg11[%c0_31, %c0_32] : memref<16x32xf32, #tpu.memory_space<vmem>>, vector<16x32xf32>
      tpu.vector_store %arg11[%c0_31, %c0_32], %49 {strides = array<i32>} : memref<16x32xf32, #tpu.memory_space<vmem>>, vector<16x32xf32>,
    } else {
    }
    %c0 = arith.constant 0 : index
    %c0_1 = arith.constant 0 : index
    %3 = vector.load %arg10[%c0, %c0_1] : memref<16x32xbf16, #tpu.memory_space<vmem>>, vector<16x32xbf16>
    %c0_2 = arith.constant 0 : index
    %c0_3 = arith.constant 0 : index
    %4 = vector.load %arg5[%c0_2, %c0_3] : memref<32x64xbf16, #tpu.memory_space<vmem>>, vector<32x64xbf16>
    %cst = arith.constant dense<0.000000e+00> : vector<16x64xf32>
    %5 = tpu.matmul %3, %4, %cst {dimension_numbers = #tpu.dot_dimension_numbers<[1], [0], [0], [1], [0, 0, 1, 1], [], []>} : vector<16x32xbf16>, vector<32x64xbf16>, vector<16x64xf32> -> vector<16x64xf32>
    %c0_4 = arith.constant 0 : index
    %c0_5 = arith.constant 0 : index
    %6 = vector.load %arg6[%c0_4, %c0_5] : memref<1x64xf32, #tpu.memory_space<vmem>>, vector<1x64xf32>
    %7 = vector.broadcast %6 : vector<1x64xf32> to vector<16x64xf32>
    %8 = arith.addf %5, %7 : vector<16x64xf32>
    %cst_6 = arith.constant 0.000000e+00 : f32
    %9 = vector.broadcast %cst_6 : f32 to vector<16x64xf32>
    %10 = arith.maximumf %8, %9 : vector<16x64xf32>
    %c0_7 = arith.constant 0 : index
    %c0_8 = arith.constant 0 : index
    %11 = vector.load %arg11[%c0_7, %c0_8] : memref<16x32xf32, #tpu.memory_space<vmem>>, vector<16x32xf32>
    %12 = arith.truncf %10 : vector<16x64xf32> to vector<16x64xbf16>
    %c0_9 = arith.constant 0 : index
    %c0_10 = arith.constant 0 : index
    %13 = vector.load %arg7[%c0_9, %c0_10] : memref<64x32xbf16, #tpu.memory_space<vmem>>, vector<64x32xbf16>
    %cst_11 = arith.constant dense<0.000000e+00> : vector<16x32xf32>
    %14 = tpu.matmul %12, %13, %cst_11 {dimension_numbers = #tpu.dot_dimension_numbers<[1], [0], [0], [1], [0, 0, 1, 1], [], []>} : vector<16x64xbf16>, vector<64x32xbf16>, vector<16x32xf32> -> vector<16x32xf32>
    %15 = arith.addf %11, %14 : vector<16x32xf32>
    %c0_12 = arith.constant 0 : index
    %c0_13 = arith.constant 0 : index
    %16 = vector.load %arg11[%c0_12, %c0_13] : memref<16x32xf32, #tpu.memory_space<vmem>>, vector<16x32xf32>
    tpu.vector_store %arg11[%c0_12, %c0_13], %15 {strides = array<i32>} : memref<16x32xf32, #tpu.memory_space<vmem>>, vector<16x32xf32>,
    %c0_i32_14 = arith.constant 0 : i32
    %17 = arith.cmpi eq, %arg1, %c0_i32_14 : i32
    %18 = arith.extui %17 : i1 to i32
    %c0_i32_15 = arith.constant 0 : i32
    %19 = arith.cmpi ne, %18, %c0_i32_15 : i32
    scf.if %19 {
      %c0_16 = arith.constant 0 : index
      %c0_17 = arith.constant 0 : index
      %20 = vector.load %arg11[%c0_16, %c0_17] : memref<16x32xf32, #tpu.memory_space<vmem>>, vector<16x32xf32>
      %c0_18 = arith.constant 0 : index
      %c0_19 = arith.constant 0 : index
      %21 = vector.load %arg8[%c0_18, %c0_19] : memref<1x32xf32, #tpu.memory_space<vmem>>, vector<1x32xf32>
      %22 = vector.broadcast %21 : vector<1x32xf32> to vector<16x32xf32>
      %23 = arith.addf %20, %22 : vector<16x32xf32>
      %c0_20 = arith.constant 0 : index
      %c0_21 = arith.constant 0 : index
      %24 = vector.load %arg2[%c0_20, %c0_21] : memref<16x32xf32, #tpu.memory_space<vmem>>, vector<16x32xf32>
      %25 = arith.addf %23, %24 : vector<16x32xf32>
      %c0_22 = arith.constant 0 : index
      %c0_23 = arith.constant 0 : index
      %26 = vector.load %arg9[%c0_22, %c0_23] : memref<16x32xf32, #tpu.memory_space<vmem>>, vector<16x32xf32>
      tpu.vector_store %arg9[%c0_22, %c0_23], %25 {strides = array<i32>} : memref<16x32xf32, #tpu.memory_space<vmem>>, vector<16x32xf32>,
    } else {
    }
    return
  }
  func.func @transform_0(%arg0: i32, %arg1: i32) -> (i32, i32) {
    %c0_i32 = arith.constant 0 : i32
    %c0_i32_0 = arith.constant 0 : i32
    return %arg0, %c0_i32 : i32, i32
  }
  func.func @transform_1(%arg0: i32, %arg1: i32) -> (i32, i32) {
    %c0_i32 = arith.constant 0 : i32
    %c0_i32_0 = arith.constant 0 : i32
    %c0_i32_1 = arith.constant 0 : i32
    return %c0_i32, %c0_i32_0 : i32, i32
  }
  func.func @transform_2(%arg0: i32, %arg1: i32) -> (i32, i32) {
    %c0_i32 = arith.constant 0 : i32
    %c0_i32_0 = arith.constant 0 : i32
    %c0_i32_1 = arith.constant 0 : i32
    return %c0_i32, %c0_i32_0 : i32, i32
  }
  func.func @transform_3(%arg0: i32, %arg1: i32) -> (i32, i32) {
    %c0_i32 = arith.constant 0 : i32
    %c0_i32_0 = arith.constant 0 : i32
    return %c0_i32, %arg1 : i32, i32
  }
  func.func @transform_4(%arg0: i32, %arg1: i32) -> (i32, i32) {
    %c0_i32 = arith.constant 0 : i32
    %c0_i32_0 = arith.constant 0 : i32
    return %c0_i32, %arg1 : i32, i32
  }
  func.func @transform_5(%arg0: i32, %arg1: i32) -> (i32, i32) {
    %c0_i32 = arith.constant 0 : i32
    %c0_i32_0 = arith.constant 0 : i32
    return %arg1, %c0_i32 : i32, i32
  }
  func.func @transform_6(%arg0: i32, %arg1: i32) -> (i32, i32) {
    %c0_i32 = arith.constant 0 : i32
    %c0_i32_0 = arith.constant 0 : i32
    %c0_i32_1 = arith.constant 0 : i32
    return %c0_i32, %c0_i32_0 : i32, i32
  }
  func.func @transform_7(%arg0: i32, %arg1: i32) -> (i32, i32) {
    %c0_i32 = arith.constant 0 : i32
    %c0_i32_0 = arith.constant 0 : i32
    return %arg0, %c0_i32 : i32, i32
  }
}

</mosaic_0001>

<bundles_post_ra>
// kernel: tpu_custom_call.1
= control target key start
LH: loop header
LB: loop body
LE: loop exit
PB: predicated region body
PF: predicated region fallthrough
CT: control target
= control target key end

     0   :  { %vm34_vm0 = vcmask 261120   ;;  %s479_s0 = inlined_call_operand.vmem [shape: f32[16,32], index: 0, kind: input, shape index: {}]   ;;  %s480_s1 = inlined_call_operand.vmem [shape: f32[1,32], index: 1, kind: input, shape index: {}]   ;;  %s481_s2 = inlined_call_operand.vmem [shape: f32[1,32], index: 2, kind: input, shape index: {}]   ;;  %s482_s3 = inlined_call_operand.vmem [shape: bf16[32,64], index: 3, kind: input, shape index: {}]   ;;  %s483_s4 = inlined_call_operand.vmem [shape: f32[1,64], index: 4, kind: input, shape index: {}]   ;;  %s484_s5 = inlined_call_operand.vmem [shape: bf16[64,32], index: 5, kind: input, shape index: {}]   ;;  %s485_s6 = inlined_call_operand.vmem [shape: f32[1,32], index: 6, kind: input, shape index: {}]   ;;  %s486_s7 = inlined_call_operand.hbm [shape: f32[16,32], index: 7, kind: output, shape index: {}]  }
   0x1   :  { %v408_v0 = vld [vmem:[%s479_s0] sm:$0xff]  ;;  %v413_v1 = vld [vmem:[%s479_s0 + $0x8] sm:$0xff] }
   0x2   :  { %v35_v2 = vsel %vm34_vm0, %v408_v0, 0.0  ;;  %v44_v3 = vmul.f32 %v408_v0, %v408_v0  ;;  %v45_v4 = vmul.f32 %v413_v1, %v413_v1  ;;  %v38_v6 = vsel %vm34_vm0, %v413_v1, 0.0 }
   0x3   :  { %36 = vadd.xlane.f32.xlu0 %v35_v2 }
   0x4   :  { %v46_v5 = vsel %vm34_vm0, %v44_v3, 0.0  ;;  %v49_v7 = vsel %vm34_vm0, %v45_v4, 0.0 }
   0x5   :  { %47 = vadd.xlane.f32.xlu1 %v46_v5 }
   0x6   :  { %12 = vsyncpa [#allocation5], 0  ;;  %v326_v8 = vld [vmem:[%s482_s3] sm:$0xff]   ;;  %v360_v9 = vmov 0.0   ;;  %v327_v10 = vld [vmem:[%s482_s3 + $0x8] sm:$0xff]   ;;  %vm361_vm1 = vmmov 0  }
   0x7   :  { %39 = vadd.xlane.f32.xlu0 %v38_v6  ;;  %301 = vmatprep.subr.bf16.mxu0 %v360_v9  ;;  %88 = vst.msk [vmem:[#allocation3] sm:$0xff] %vm34_vm0, %v360_v9  ;;  %89 = vst.msk [vmem:[#allocation3 + $0x8] sm:$0xff] %vm34_vm0, %v360_v9  ;;  %v328_v11 = vld [vmem:[%s484_s5] sm:$0xff]   ;;  %v329_v12 = vld [vmem:[%s484_s5 + $0x8] sm:$0xff]   ;;  %vm196_vm2 = vcmask 523264   ;;  %s362_s19 = smov [#allocation4]  }
   0x8   :  { %309 = vmatprep.subr.bf16.mxu1 %v360_v9  ;;  %302 = vmatpush3.bf16.msra.mxu0 %v326_v8  ;;  %v281_v32 = vld [vmem:[%s480_s1] ss:$0 sm:$0xff]  ;;  %v330_v43 = vld [vmem:[%s484_s5 + $0x10] sm:$0xff]   ;;  %v331_v44 = vld [vmem:[%s484_s5 + $0x18] sm:$0xff]   ;;  %s270_s20 = sshll.u32 %s362_s19, 4  ;;  %s271_s20 = int_to_ptr.vmem [resolvable:$true] %s270_s20 }
   0x9   :  { %50 = vadd.xlane.f32.xlu1 %v49_v7  ;;  %305 = vmatprep.mubr.msk.bf16.mxu0 %vm361_vm1, %v360_v9  ;;  %v282_v37 = vld [vmem:[%s481_s2] ss:$0 sm:$0xff]  ;;  %s336_s21 = scalar_lea.vmem %s271_s20, 256  ;;  %p341_p1 = scmp.lt.s32.totalorder %s271_s20, %s271_s20 }
   0xa   :  { %303 = vmatprep.subr.bf16.mxu0 %v360_v9  ;;  %317 = vmatprep.mubr.msk.bf16.mxu1 %vm361_vm1, %v360_v9  ;;  %v283_v45 = vld [vmem:[%s483_s4] ss:$0 sm:$0xff]  ;;  %p337_p0 = scmp.ne.s32.totalorder %s271_s20, %s336_s21  ;;  %p342_p2 = scmp.lt.s32.totalorder %s336_s21, %s336_s21 }
   0xb   :  { %310 = vmatpush3.bf16.msra.mxu1 %v328_v11  ;;  %v292_v63 = vld [vmem:[%s485_s6] ss:$0 sm:$0xff] }
   0xc   :  { %304 = vmatpush3.bf16.msra.mxu0 %v327_v10  ;;  %311 = vmatprep.subr.bf16.mxu1 %v360_v9  ;;  %p343_p3 = por %p342_p2, %p341_p1 }
   0xe   :  { %v161_v55 = vld [vmem:[#allocation3] sm:$0xff]  ;;  %v162_v57 = vld [vmem:[#allocation3 + $0x8] sm:$0xff]  ;;  %p344_p4 = pnand %p343_p3, %p337_p0 }
   0xf   :  { %312 = vmatpush3.bf16.msra.mxu1 %v329_v12 }
  0x10   :  { %313 = vmatprep.subr.bf16.mxu1 %v360_v9 }
  0x13   :  { %314 = vmatpush3.bf16.msra.mxu1 %v330_v43 }
  0x14   :  { %315 = vmatprep.subr.bf16.mxu1 %v360_v9 }
  0x17   :  { %316 = vmatpush3.bf16.msra.mxu1 %v331_v44 }
  0x90   :  { %v37_v13 = vpop.xlane.xlu0 %36 }
  0x91   :  { %v42_v14 = vmul.f32 0.03125, %v37_v13 }
  0x92   :  { %v48_v15 = vpop.xlane.xlu1 %47 }
  0x93   :  { %v54_v16 = vmul.f32 %v42_v14, %v42_v14  ;;  %v52_v17 = vmul.f32 0.03125, %v48_v15  ;;  %v60_v29 = vsub.f32 %v408_v0, %v42_v14 }
  0x94   :  { %v40_v18 = vpop.xlane.xlu0 %39 }
  0x95   :  { %v56_v19 = vsub.f32 %v52_v17, %v54_v16  ;;  %v43_v20 = vmul.f32 0.03125, %v40_v18 }
  0x96   :  { %v51_v21 = vpop.xlane.xlu1 %50 }
  0x97   :  { %v58_v22 = vmax.f32 %v56_v19, 0.0  ;;  %v55_v23 = vmul.f32 %v43_v20, %v43_v20  ;;  %v53_v24 = vmul.f32 0.03125, %v51_v21  ;;  %v61_v33 = vsub.f32 %v413_v1, %v43_v20 }
  0x99   :  { %v62_v25 = vadd.f32 1e-06, %v58_v22  ;;  %v57_v26 = vsub.f32 %v53_v24, %v55_v23 }
  0x9b   :  { %332 = vrsqrt.f32 %v62_v25  ;;  %v59_v27 = vmax.f32 %v57_v26, 0.0 }
  0x9d   :  { %v63_v28 = vadd.f32 1e-06, %v59_v27 }
  0x9f   :  { %334 = vrsqrt.f32 %v63_v28 }
  0xa5   :  { %v333_v30 = vpop.eup %332 }
  0xa6   :  { %v66_v31 = vmul.f32 %v333_v30, %v60_v29 }
  0xa8   :  { %v75_v35 = vmul.f32 %v281_v32, %v66_v31 }
  0xa9   :  { %v335_v34 = vpop.eup %334 }
  0xaa   :  { %v67_v36 = vmul.f32 %v335_v34, %v61_v33  ;;  %v84_v39 = vadd.f32 %v282_v37, %v75_v35 }
  0xac   :  { %v76_v38 = vmul.f32 %v281_v32, %v67_v36 }
  0xae   :  { %v85_v40 = vadd.f32 %v282_v37, %v76_v38 }
  0xb0   :  { %v86_v41 = vpack.c.bf16 %v85_v40, %v84_v39 }
  0xb2   :  { %87 = vst.msk [vmem:[#allocation2] sm:$0xff] %vm34_vm0, %v86_v41 }
  0xb9   :  { %v90_v42 = vld [vmem:[#allocation2] sm:$0xff] }
  0xba   :  { %306 = vmatmul.mubr.msk.bf16.vlgmr.msra.gmra.mrb[0].mxu0 %vm34_vm0, %v90_v42 }
 0x18d   :  { %v152_v46 = vpop.f32.mrb[0].mxu0 }
 0x18e   :  { %v153_v47 = vadd.f32 %v283_v45, %v152_v46  ;;  %v307_v48 = vpop.f32.mrb[1].mxu0 }
 0x18f   :  { %v155_v49 = vpop.f32.mrb[2].mxu0 }
 0x190   :  { %v156_v50 = vadd.f32 %v283_v45, %v155_v49  ;;  %v308_v51 = vpop.f32.mrb[3].mxu0  ;;  %v159_v52 = vmax.f32 %v153_v47, 0.0 }
 0x192   :  { %v160_v53 = vmax.f32 %v156_v50, 0.0 }
 0x194   :  { %v163_v54 = vpack.c.bf16 %v160_v53, %v159_v52 }
 0x196   :  { %318 = vmatmul.mubr.msk.bf16.vlgmr.msra.gmra.mrb[0].mxu1 %vm196_vm2, %v163_v54 }
 0x269   :  { %v234_v56 = vpop.f32.mrb[0].mxu1 }
 0x26a   :  { %v241_v58 = vadd.f32 %v234_v56, %v161_v55  ;;  %v319_v59 = vpop.f32.mrb[1].mxu1 }
 0x26b   :  { %v237_v60 = vpop.f32.mrb[2].mxu1 }
 0x26c   :  { %243 = vst.msk [vmem:[#allocation3] sm:$0xff] %vm34_vm0, %v241_v58  ;;  %v242_v61 = vadd.f32 %v237_v60, %v162_v57  ;;  %v320_v62 = vpop.f32.mrb[3].mxu1 }
 0x26e   :  { %244 = vst.msk [vmem:[#allocation3 + $0x8] sm:$0xff] %vm34_vm0, %v242_v61 }
 0x273   :  { %v248_v2 = vld [vmem:[#allocation3] sm:$0xff] }
 0x274   :  { %v257_v3 = vadd.f32 %v292_v63, %v248_v2 }
 0x275   :  { %v249_v4 = vld [vmem:[#allocation3 + $0x8] sm:$0xff] }
 0x276   :  { %v258_v5 = vadd.f32 %v292_v63, %v249_v4  ;;  %v261_v6 = vadd.f32 %v257_v3, %v408_v0 }
 0x278   :  { %v262_v7 = vadd.f32 %v258_v5, %v413_v1  ;;  %263 = vst.msk [vmem:[#allocation4] sm:$0xff] %vm34_vm0, %v261_v6 }
 0x27a   :  { %264 = vst.msk [vmem:[#allocation4 + $0x8] sm:$0xff] %vm34_vm0, %v262_v7 }
 0x27b   :  { %347 = shalt.err (!%p344_p4)
}
 0x27c   :  { %s348_s23 = scalar_lea.hbm %s486_s7, 256 }
 0x27d   :  { %p349_p5 = scmp.ne.s32.totalorder %s486_s7, %s348_s23  ;;  %p352_p6 = scmp.lt.u32.totalorder %s348_s23, %s486_s7 }
 0x27f   :  { %p354_p7 = pnand %p352_p6, %p349_p5 }
 0x281   :  { %357 = shalt.err (!%p354_p7)
}
 0x282   :  { %s363_s0 = smov 128   ;;  %s364_s28 = smov 8  }
 0x283   :  { %276 = dma.vmem_to_hbm [thread:$0]  %s271_s20, 256, %s486_s7, [#allocation5], %s363_s0, %s363_s0, %s364_s28  }
 0x284   :  { %358 = dma.done.wait [#allocation5], 256  }
 0x285   :  { %359 = vsyncadd [#allocation5], 4294967040 }
 0x286   :  { %280 = vsyncpa [#allocation5], 1 }

</bundles_post_ra>
